<compile_context>
chip_gen: v7x
topology: tpu7x:2x2x1
jax: 0.10.0
libtpu: 0.0.40
codegen_flags: <defaults>
</compile_context>

<pallas_src>
import functools

import jax
import jax.numpy as jnp
from jax.experimental import pallas as pl
from jax.experimental.pallas import tpu as pltpu

LN_EPS = 1e-5


def _round_up(a: int, m: int) -> int:
    return ((a + m - 1) // m) * m


def _pwff_kernel(x_ref, w1_ref, b1_ref, w2_ref, b2_ref, g_ref, beta_ref, o_ref,
                 *, mxu_dtype):
    # x_ref: (tm, d_model) tile of rows.
    x_in = x_ref[...]

    # --- W1 + ReLU: MXU-native operand dtype (bf16 by default), f32 accumulation.
    h = jnp.dot(x_in.astype(mxu_dtype), w1_ref[...].astype(mxu_dtype),
                preferred_element_type=jnp.float32)
    h = jnp.maximum(h + b1_ref[...].astype(jnp.float32), 0.0)

    # --- W2
    y = jnp.dot(h.astype(mxu_dtype), w2_ref[...].astype(mxu_dtype),
                preferred_element_type=jnp.float32)
    y = y + b2_ref[...].astype(jnp.float32)

    # dropout (identity in eval mode) + residual, in f32
    y = y + x_in.astype(jnp.float32)

    # LayerNorm over last dim (biased variance, matches torch.nn.LayerNorm), f32
    mean = jnp.mean(y, axis=-1, keepdims=True)
    centered = y - mean
    var = jnp.mean(centered * centered, axis=-1, keepdims=True)
    y = centered * jax.lax.rsqrt(var + LN_EPS)
    y = y * g_ref[...].astype(jnp.float32) + beta_ref[...].astype(jnp.float32)

    o_ref[...] = y.astype(o_ref.dtype)


def _tpu_vmem_and_cores():
    """(per-core VMEM bytes, tensorcores per chip) — conservative fallback."""
    try:
        info = pltpu.get_tpu_info()
        vmem = int(getattr(info, "vmem_capacity_bytes", 128 * 2**20))
    except Exception:  # query not available (e.g. interpret mode / old jax)
        vmem = 128 * 2**20
    # v7x exposes 64 MiB VMEM per TensorCore and has 2 TCs/chip; the 128-MiB
    # chips (v5e / v6e) have a single TC.
    n_cores = 2 if vmem <= 64 * 2**20 else 1
    return vmem, n_cores


def _pick_row_tile(n_rows: int, tm: int, align: int, n_cores: int):
    """Return (row_tile, padded_rows); prefers tiles that divide n_rows."""
    tm = max(align, _round_up(int(tm), align))

    # On 2-TC chips aim for >= 4 grid blocks (>= 2 pipelined steps per core),
    # but never shrink the tile below 512 rows to get there.
    if n_cores >= 2:
        cap = _round_up(pl.cdiv(n_rows, 4), align)
        if cap >= 512:
            tm = min(tm, cap)

    if n_rows <= tm:
        tile = _round_up(n_rows, align)
        return tile, tile

    # Prefer an exact divisor of n_rows close to the target tile (no pad copy).
    if n_rows % align == 0:
        lo = max(align, (tm // 2 // align) * align)
        cand = tm
        while cand >= lo:
            if n_rows % cand == 0:
                return cand, n_rows
            cand -= align

    return tm, _round_up(n_rows, tm)


def position_wise_feed_forward(x, w1, b1, w2, b2, gamma, beta, *,
                               tm=1024, mxu_dtype=jnp.bfloat16,
                               vmem_limit_bytes=None):
    """x: (B, L, d_model) -> (B, L, d_model)."""
    B, L, d_model = x.shape
    hidden = w1.shape[1]
    n_rows = B * L

    vmem_cap, n_cores = _tpu_vmem_and_cores()
    align = 16 if x.dtype == jnp.bfloat16 else 8
    tm_eff, padded_rows = _pick_row_tile(n_rows, tm, align, n_cores)
    grid = (padded_rows // tm_eff,)

    x2d = x.reshape(n_rows, d_model)
    if padded_rows != n_rows:
        # Fallback only; padded rows are benign under LayerNorm and sliced off.
        x2d = jnp.pad(x2d, ((0, padded_rows - n_rows), (0, 0)))

    # Cast weights to the MXU operand dtype once at the boundary.
    w1_k = w1.astype(mxu_dtype)
    w2_k = w2.astype(mxu_dtype)
    b1_2d = b1.reshape(1, hidden)
    b2_2d = b2.reshape(1, d_model)
    g_2d = gamma.reshape(1, d_model)
    beta_2d = beta.reshape(1, d_model)

    bpe_x = x.dtype.itemsize
    bpe_w = jnp.dtype(mxu_dtype).itemsize

    # True VMEM footprint: double-buffered x/out tiles, single-buffered params,
    # f32 hidden/LayerNorm intermediates.  ~50% headroom, chip-dependent cap.
    est = (2 * tm_eff * d_model * bpe_x                       # x tile (2 bufs)
           + 2 * tm_eff * d_model * bpe_x                     # out tile (2 bufs)
           + 2 * d_model * hidden * bpe_w                     # W1 + W2 (1 buf)
           + (2 * hidden + 6 * d_model) * 4                   # biases/gamma/beta
           + tm_eff * hidden * (4 + bpe_w)                    # h (f32 + cast)
           + 2 * tm_eff * d_model * 4)                        # y / LN temporaries
    if vmem_limit_bytes is None:
        cap = 48 * 2**20 if vmem_cap <= 64 * 2**20 else 100 * 2**20
        vmem_limit_bytes = int(min(max(3 * est // 2 + (2 << 20), 8 << 20), cap))

    cost = pl.CostEstimate(
        flops=4 * n_rows * d_model * hidden + 10 * n_rows * d_model,
        transcendentals=n_rows,
        bytes_accessed=2 * n_rows * d_model * bpe_x + 2 * d_model * hidden * bpe_w,
    )

    kernel = functools.partial(_pwff_kernel, mxu_dtype=mxu_dtype)
    out_shape = jax.ShapeDtypeStruct((padded_rows, d_model), x.dtype)

    def _run(single_buffer_params: bool):
        def const_spec(shape):
            if single_buffer_params:
                return pl.BlockSpec(shape, lambda i: (0, 0),
                                    pipeline_mode=pl.Buffered(1))
            return pl.BlockSpec(shape, lambda i: (0, 0))

        return pl.pallas_call(
            kernel,
            out_shape=out_shape,
            grid_spec=pltpu.PrefetchScalarGridSpec(
                num_scalar_prefetch=0,
                grid=grid,
                in_specs=[
                    pl.BlockSpec((tm_eff, d_model), lambda i: (i, 0)),  # x rows
                    const_spec((d_model, hidden)),                      # W1
                    const_spec((1, hidden)),                            # b1
                    const_spec((hidden, d_model)),                      # W2
                    const_spec((1, d_model)),                           # b2
                    const_spec((1, d_model)),                           # gamma
                    const_spec((1, d_model)),                           # beta
                ],
                out_specs=pl.BlockSpec((tm_eff, d_model), lambda i: (i, 0)),
            ),
            compiler_params=pltpu.CompilerParams(
                dimension_semantics=("parallel",),
                vmem_limit_bytes=vmem_limit_bytes,
            ),
            cost_estimate=cost,
        )(x2d, w1_k, b1_2d, w2_k, b2_2d, g_2d, beta_2d)

    try:
        out2d = _run(True)          # single-buffer constant operands
    except Exception:
        out2d = _run(False)         # fallback: default double-buffering

    if padded_rows != n_rows:
        out2d = out2d[:n_rows]
    return out2d.reshape(B, L, d_model)


def _reference(x, w1, b1, w2, b2, gamma, beta, mxu_dtype=jnp.float32):
    """Pure-JAX reference mirroring the kernel's matmul operand dtype."""
    h = jnp.dot(x.astype(mxu_dtype), w1.astype(mxu_dtype),
                preferred_element_type=jnp.float32)
    h = jnp.maximum(h + b1, 0.0)
    y = jnp.dot(h.astype(mxu_dtype), w2.astype(mxu_dtype),
                preferred_element_type=jnp.float32)
    y = (y + b2) + x
    mean = jnp.mean(y, axis=-1, keepdims=True)
    var = jnp.mean((y - mean) ** 2, axis=-1, keepdims=True)
    y = (y - mean) / jnp.sqrt(var + LN_EPS)
    return y * gamma + beta


if __name__ == "__main__":
    # Shapes consistent with GMNetwork's Transformer2 encoder:
    #   d_model=128, hidden_size=256, word_pad_len=10; small batch of 4.
    B, L, d_model, hidden = 4, 10, 128, 256

    key = jax.random.PRNGKey(0)
    kx, kw1, kb1, kw2, kb2, kg, kbt = jax.random.split(key, 7)

    x = jax.random.normal(kx, (B, L, d_model), dtype=jnp.float32)
    w1 = jax.random.normal(kw1, (d_model, hidden), dtype=jnp.float32) / jnp.sqrt(d_model)
    b1 = 0.01 * jax.random.normal(kb1, (hidden,), dtype=jnp.float32)
    w2 = jax.random.normal(kw2, (hidden, d_model), dtype=jnp.float32) / jnp.sqrt(hidden)
    b2 = 0.01 * jax.random.normal(kb2, (d_model,), dtype=jnp.float32)
    gamma = 1.0 + 0.1 * jax.random.normal(kg, (d_model,), dtype=jnp.float32)
    beta = 0.1 * jax.random.normal(kbt, (d_model,), dtype=jnp.float32)

    out = position_wise_feed_forward(x, w1, b1, w2, b2, gamma, beta)
    out = jax.block_until_ready(out)
    assert out.shape == (B, L, d_model)

    # Tight check against a reference with identical bf16-operand matmul numerics.
    ref_bf16 = _reference(x, w1, b1, w2, b2, gamma, beta, mxu_dtype=jnp.bfloat16)
    assert jnp.allclose(out, ref_bf16, atol=2e-4, rtol=2e-4), "mismatch vs bf16 reference"

    # Looser check against the exact f32 module semantics (bf16 MXU rounding only).
    ref_f32 = _reference(x, w1, b1, w2, b2, gamma, beta, mxu_dtype=jnp.float32)
    assert jnp.allclose(out, ref_f32, atol=5e-2, rtol=5e-2), "mismatch vs f32 reference"

    print("KERNEL_OK")
</pallas_src>

<mosaic_0001>
module attributes {stable_mosaic.version = 11 : i64} {
  func.func @_pwff_kernel(%arg0: i32, %arg1: memref<40x128xf32, #tpu.memory_space<vmem>>, %arg2: memref<128x256xbf16, #tpu.memory_space<vmem>>, %arg3: memref<1x256xf32, #tpu.memory_space<vmem>>, %arg4: memref<256x128xbf16, #tpu.memory_space<vmem>>, %arg5: memref<1x128xf32, #tpu.memory_space<vmem>>, %arg6: memref<1x128xf32, #tpu.memory_space<vmem>>, %arg7: memref<1x128xf32, #tpu.memory_space<vmem>>, %arg8: memref<40x128xf32, #tpu.memory_space<vmem>>) attributes {dimension_semantics = [#tpu.dimension_semantics<parallel>], iteration_bounds = array<i64: 1>, scalar_prefetch = 0 : i64, scratch_operands = 0 : i64, tpu.core_type = #tpu.core_type<tc>, window_params = [{transform_indices = @transform_0, window_bounds = array<i64: 40, 128>}, {pipeline_mode = #tpu.pipeline_mode<synchronous>, transform_indices = @transform_1, window_bounds = array<i64: 128, 256>}, {pipeline_mode = #tpu.pipeline_mode<synchronous>, transform_indices = @transform_2, window_bounds = array<i64: 1, 256>}, {pipeline_mode = #tpu.pipeline_mode<synchronous>, transform_indices = @transform_3, window_bounds = array<i64: 256, 128>}, {pipeline_mode = #tpu.pipeline_mode<synchronous>, transform_indices = @transform_4, window_bounds = array<i64: 1, 128>}, {pipeline_mode = #tpu.pipeline_mode<synchronous>, transform_indices = @transform_5, window_bounds = array<i64: 1, 128>}, {pipeline_mode = #tpu.pipeline_mode<synchronous>, transform_indices = @transform_6, window_bounds = array<i64: 1, 128>}, {transform_indices = @transform_7, window_bounds = array<i64: 40, 128>}]} {
    %c0 = arith.constant 0 : index
    %c0_0 = arith.constant 0 : index
    %0 = vector.load %arg1[%c0, %c0_0] : memref<40x128xf32, #tpu.memory_space<vmem>>, vector<40x128xf32>
    %1 = arith.truncf %0 : vector<40x128xf32> to vector<40x128xbf16>
    %c0_1 = arith.constant 0 : index
    %c0_2 = arith.constant 0 : index
    %2 = vector.load %arg2[%c0_1, %c0_2] : memref<128x256xbf16, #tpu.memory_space<vmem>>, vector<128x256xbf16>
    %cst = arith.constant dense<0.000000e+00> : vector<40x256xf32>
    %3 = tpu.matmul %1, %2, %cst {dimension_numbers = #tpu.dot_dimension_numbers<[1], [0], [0], [1], [0, 0, 1, 1], [], []>} : vector<40x128xbf16>, vector<128x256xbf16>, vector<40x256xf32> -> vector<40x256xf32>
    %c0_3 = arith.constant 0 : index
    %c0_4 = arith.constant 0 : index
    %4 = vector.load %arg3[%c0_3, %c0_4] : memref<1x256xf32, #tpu.memory_space<vmem>>, vector<1x256xf32>
    %5 = vector.broadcast %4 : vector<1x256xf32> to vector<40x256xf32>
    %6 = arith.addf %3, %5 : vector<40x256xf32>
    %cst_5 = arith.constant 0.000000e+00 : f32
    %7 = vector.broadcast %cst_5 : f32 to vector<40x256xf32>
    %8 = arith.maximumf %6, %7 : vector<40x256xf32>
    %9 = arith.truncf %8 : vector<40x256xf32> to vector<40x256xbf16>
    %c0_6 = arith.constant 0 : index
    %c0_7 = arith.constant 0 : index
    %10 = vector.load %arg4[%c0_6, %c0_7] : memref<256x128xbf16, #tpu.memory_space<vmem>>, vector<256x128xbf16>
    %cst_8 = arith.constant dense<0.000000e+00> : vector<40x128xf32>
    %11 = tpu.matmul %9, %10, %cst_8 {dimension_numbers = #tpu.dot_dimension_numbers<[1], [0], [0], [1], [0, 0, 1, 1], [], []>} : vector<40x256xbf16>, vector<256x128xbf16>, vector<40x128xf32> -> vector<40x128xf32>
    %c0_9 = arith.constant 0 : index
    %c0_10 = arith.constant 0 : index
    %12 = vector.load %arg5[%c0_9, %c0_10] : memref<1x128xf32, #tpu.memory_space<vmem>>, vector<1x128xf32>
    %13 = vector.broadcast %12 : vector<1x128xf32> to vector<40x128xf32>
    %14 = arith.addf %11, %13 : vector<40x128xf32>
    %15 = arith.addf %14, %0 : vector<40x128xf32>
    %cst_11 = arith.constant dense<0.000000e+00> : vector<40xf32>
    %16 = vector.multi_reduction <add>, %15, %cst_11 [1] : vector<40x128xf32> to vector<40xf32>
    %17 = vector.shape_cast %16 : vector<40xf32> to vector<40x1xf32>
    %cst_12 = arith.constant 1.280000e+02 : f32
    %18 = vector.broadcast %cst_12 : f32 to vector<40x1xf32>
    %19 = arith.divf %17, %18 : vector<40x1xf32>
    %20 = vector.broadcast %19 : vector<40x1xf32> to vector<40x128xf32>
    %21 = arith.subf %15, %20 : vector<40x128xf32>
    %22 = arith.mulf %21, %21 : vector<40x128xf32>
    %cst_13 = arith.constant dense<0.000000e+00> : vector<40xf32>
    %23 = vector.multi_reduction <add>, %22, %cst_13 [1] : vector<40x128xf32> to vector<40xf32>
    %24 = vector.shape_cast %23 : vector<40xf32> to vector<40x1xf32>
    %cst_14 = arith.constant 1.280000e+02 : f32
    %25 = vector.broadcast %cst_14 : f32 to vector<40x1xf32>
    %26 = arith.divf %24, %25 : vector<40x1xf32>
    %cst_15 = arith.constant 9.99999974E-6 : f32
    %27 = vector.broadcast %cst_15 : f32 to vector<40x1xf32>
    %28 = arith.addf %26, %27 : vector<40x1xf32>
    %29 = math.rsqrt %28 : vector<40x1xf32>
    %30 = vector.broadcast %29 : vector<40x1xf32> to vector<40x128xf32>
    %31 = arith.mulf %21, %30 : vector<40x128xf32>
    %c0_16 = arith.constant 0 : index
    %c0_17 = arith.constant 0 : index
    %32 = vector.load %arg6[%c0_16, %c0_17] : memref<1x128xf32, #tpu.memory_space<vmem>>, vector<1x128xf32>
    %33 = vector.broadcast %32 : vector<1x128xf32> to vector<40x128xf32>
    %34 = arith.mulf %31, %33 : vector<40x128xf32>
    %c0_18 = arith.constant 0 : index
    %c0_19 = arith.constant 0 : index
    %35 = vector.load %arg7[%c0_18, %c0_19] : memref<1x128xf32, #tpu.memory_space<vmem>>, vector<1x128xf32>
    %36 = vector.broadcast %35 : vector<1x128xf32> to vector<40x128xf32>
    %37 = arith.addf %34, %36 : vector<40x128xf32>
    %c0_20 = arith.constant 0 : index
    %c0_21 = arith.constant 0 : index
    %38 = vector.load %arg8[%c0_20, %c0_21] : memref<40x128xf32, #tpu.memory_space<vmem>>, vector<40x128xf32>
    tpu.vector_store %arg8[%c0_20, %c0_21], %37 {strides = array<i32>} : memref<40x128xf32, #tpu.memory_space<vmem>>, vector<40x128xf32>,
    return
  }
  func.func @transform_0(%arg0: i32) -> (i32, i32) {
    %c0_i32 = arith.constant 0 : i32
    %c0_i32_0 = arith.constant 0 : i32
    return %arg0, %c0_i32 : i32, i32
  }
  func.func @transform_1(%arg0: i32) -> (i32, i32) {
    %c0_i32 = arith.constant 0 : i32
    %c0_i32_0 = arith.constant 0 : i32
    %c0_i32_1 = arith.constant 0 : i32
    return %c0_i32, %c0_i32_0 : i32, i32
  }
  func.func @transform_2(%arg0: i32) -> (i32, i32) {
    %c0_i32 = arith.constant 0 : i32
    %c0_i32_0 = arith.constant 0 : i32
    %c0_i32_1 = arith.constant 0 : i32
    return %c0_i32, %c0_i32_0 : i32, i32
  }
  func.func @transform_3(%arg0: i32) -> (i32, i32) {
    %c0_i32 = arith.constant 0 : i32
    %c0_i32_0 = arith.constant 0 : i32
    %c0_i32_1 = arith.constant 0 : i32
    return %c0_i32, %c0_i32_0 : i32, i32
  }
  func.func @transform_4(%arg0: i32) -> (i32, i32) {
    %c0_i32 = arith.constant 0 : i32
    %c0_i32_0 = arith.constant 0 : i32
    %c0_i32_1 = arith.constant 0 : i32
    return %c0_i32, %c0_i32_0 : i32, i32
  }
  func.func @transform_5(%arg0: i32) -> (i32, i32) {
    %c0_i32 = arith.constant 0 : i32
    %c0_i32_0 = arith.constant 0 : i32
    %c0_i32_1 = arith.constant 0 : i32
    return %c0_i32, %c0_i32_0 : i32, i32
  }
  func.func @transform_6(%arg0: i32) -> (i32, i32) {
    %c0_i32 = arith.constant 0 : i32
    %c0_i32_0 = arith.constant 0 : i32
    %c0_i32_1 = arith.constant 0 : i32
    return %c0_i32, %c0_i32_0 : i32, i32
  }
  func.func @transform_7(%arg0: i32) -> (i32, i32) {
    %c0_i32 = arith.constant 0 : i32
    %c0_i32_0 = arith.constant 0 : i32
    return %arg0, %c0_i32 : i32, i32
  }
}

module attributes {stable_mosaic.version = 11 : i64} {
  func.func @_pwff_kernel(%arg0: i32, %arg1: memref<40x128xf32, #tpu.memory_space<vmem>>, %arg2: memref<128x256xbf16, #tpu.memory_space<vmem>>, %arg3: memref<1x256xf32, #tpu.memory_space<vmem>>, %arg4: memref<256x128xbf16, #tpu.memory_space<vmem>>, %arg5: memref<1x128xf32, #tpu.memory_space<vmem>>, %arg6: memref<1x128xf32, #tpu.memory_space<vmem>>, %arg7: memref<1x128xf32, #tpu.memory_space<vmem>>, %arg8: memref<40x128xf32, #tpu.memory_space<vmem>>) attributes {dimension_semantics = [#tpu.dimension_semantics<parallel>], iteration_bounds = array<i64: 1>, scalar_prefetch = 0 : i64, scratch_operands = 0 : i64, tpu.core_type = #tpu.core_type<tc>, window_params = [{transform_indices = @transform_0, window_bounds = array<i64: 40, 128>}, {pipeline_mode = #tpu.pipeline_mode<synchronous>, transform_indices = @transform_1, window_bounds = array<i64: 128, 256>}, {pipeline_mode = #tpu.pipeline_mode<synchronous>, transform_indices = @transform_2, window_bounds = array<i64: 1, 256>}, {pipeline_mode = #tpu.pipeline_mode<synchronous>, transform_indices = @transform_3, window_bounds = array<i64: 256, 128>}, {pipeline_mode = #tpu.pipeline_mode<synchronous>, transform_indices = @transform_4, window_bounds = array<i64: 1, 128>}, {pipeline_mode = #tpu.pipeline_mode<synchronous>, transform_indices = @transform_5, window_bounds = array<i64: 1, 128>}, {pipeline_mode = #tpu.pipeline_mode<synchronous>, transform_indices = @transform_6, window_bounds = array<i64: 1, 128>}, {transform_indices = @transform_7, window_bounds = array<i64: 40, 128>}]} {
    %c0 = arith.constant 0 : index
    %c0_0 = arith.constant 0 : index
    %0 = vector.load %arg1[%c0, %c0_0] : memref<40x128xf32, #tpu.memory_space<vmem>>, vector<40x128xf32>
    %1 = arith.truncf %0 : vector<40x128xf32> to vector<40x128xbf16>
    %c0_1 = arith.constant 0 : index
    %c0_2 = arith.constant 0 : index
    %2 = vector.load %arg2[%c0_1, %c0_2] : memref<128x256xbf16, #tpu.memory_space<vmem>>, vector<128x256xbf16>
    %cst = arith.constant dense<0.000000e+00> : vector<40x256xf32>
    %3 = tpu.matmul %1, %2, %cst {dimension_numbers = #tpu.dot_dimension_numbers<[1], [0], [0], [1], [0, 0, 1, 1], [], []>} : vector<40x128xbf16>, vector<128x256xbf16>, vector<40x256xf32> -> vector<40x256xf32>
    %c0_3 = arith.constant 0 : index
    %c0_4 = arith.constant 0 : index
    %4 = vector.load %arg3[%c0_3, %c0_4] : memref<1x256xf32, #tpu.memory_space<vmem>>, vector<1x256xf32>
    %5 = vector.broadcast %4 : vector<1x256xf32> to vector<40x256xf32>
    %6 = arith.addf %3, %5 : vector<40x256xf32>
    %cst_5 = arith.constant 0.000000e+00 : f32
    %7 = vector.broadcast %cst_5 : f32 to vector<40x256xf32>
    %8 = arith.maximumf %6, %7 : vector<40x256xf32>
    %9 = arith.truncf %8 : vector<40x256xf32> to vector<40x256xbf16>
    %c0_6 = arith.constant 0 : index
    %c0_7 = arith.constant 0 : index
    %10 = vector.load %arg4[%c0_6, %c0_7] : memref<256x128xbf16, #tpu.memory_space<vmem>>, vector<256x128xbf16>
    %cst_8 = arith.constant dense<0.000000e+00> : vector<40x128xf32>
    %11 = tpu.matmul %9, %10, %cst_8 {dimension_numbers = #tpu.dot_dimension_numbers<[1], [0], [0], [1], [0, 0, 1, 1], [], []>} : vector<40x256xbf16>, vector<256x128xbf16>, vector<40x128xf32> -> vector<40x128xf32>
    %c0_9 = arith.constant 0 : index
    %c0_10 = arith.constant 0 : index
    %12 = vector.load %arg5[%c0_9, %c0_10] : memref<1x128xf32, #tpu.memory_space<vmem>>, vector<1x128xf32>
    %13 = vector.broadcast %12 : vector<1x128xf32> to vector<40x128xf32>
    %14 = arith.addf %11, %13 : vector<40x128xf32>
    %15 = arith.addf %14, %0 : vector<40x128xf32>
    %cst_11 = arith.constant dense<0.000000e+00> : vector<40xf32>
    %16 = vector.multi_reduction <add>, %15, %cst_11 [1] : vector<40x128xf32> to vector<40xf32>
    %17 = vector.shape_cast %16 : vector<40xf32> to vector<40x1xf32>
    %cst_12 = arith.constant 1.280000e+02 : f32
    %18 = vector.broadcast %cst_12 : f32 to vector<40x1xf32>
    %19 = arith.divf %17, %18 : vector<40x1xf32>
    %20 = vector.broadcast %19 : vector<40x1xf32> to vector<40x128xf32>
    %21 = arith.subf %15, %20 : vector<40x128xf32>
    %22 = arith.mulf %21, %21 : vector<40x128xf32>
    %cst_13 = arith.constant dense<0.000000e+00> : vector<40xf32>
    %23 = vector.multi_reduction <add>, %22, %cst_13 [1] : vector<40x128xf32> to vector<40xf32>
    %24 = vector.shape_cast %23 : vector<40xf32> to vector<40x1xf32>
    %cst_14 = arith.constant 1.280000e+02 : f32
    %25 = vector.broadcast %cst_14 : f32 to vector<40x1xf32>
    %26 = arith.divf %24, %25 : vector<40x1xf32>
    %cst_15 = arith.constant 9.99999974E-6 : f32
    %27 = vector.broadcast %cst_15 : f32 to vector<40x1xf32>
    %28 = arith.addf %26, %27 : vector<40x1xf32>
    %29 = math.rsqrt %28 : vector<40x1xf32>
    %30 = vector.broadcast %29 : vector<40x1xf32> to vector<40x128xf32>
    %31 = arith.mulf %21, %30 : vector<40x128xf32>
    %c0_16 = arith.constant 0 : index
    %c0_17 = arith.constant 0 : index
    %32 = vector.load %arg6[%c0_16, %c0_17] : memref<1x128xf32, #tpu.memory_space<vmem>>, vector<1x128xf32>
    %33 = vector.broadcast %32 : vector<1x128xf32> to vector<40x128xf32>
    %34 = arith.mulf %31, %33 : vector<40x128xf32>
    %c0_18 = arith.constant 0 : index
    %c0_19 = arith.constant 0 : index
    %35 = vector.load %arg7[%c0_18, %c0_19] : memref<1x128xf32, #tpu.memory_space<vmem>>, vector<1x128xf32>
    %36 = vector.broadcast %35 : vector<1x128xf32> to vector<40x128xf32>
    %37 = arith.addf %34, %36 : vector<40x128xf32>
    %c0_20 = arith.constant 0 : index
    %c0_21 = arith.constant 0 : index
    %38 = vector.load %arg8[%c0_20, %c0_21] : memref<40x128xf32, #tpu.memory_space<vmem>>, vector<40x128xf32>
    tpu.vector_store %arg8[%c0_20, %c0_21], %37 {strides = array<i32>} : memref<40x128xf32, #tpu.memory_space<vmem>>, vector<40x128xf32>,
    return
  }
  func.func @transform_0(%arg0: i32) -> (i32, i32) {
    %c0_i32 = arith.constant 0 : i32
    %c0_i32_0 = arith.constant 0 : i32
    return %arg0, %c0_i32 : i32, i32
  }
  func.func @transform_1(%arg0: i32) -> (i32, i32) {
    %c0_i32 = arith.constant 0 : i32
    %c0_i32_0 = arith.constant 0 : i32
    %c0_i32_1 = arith.constant 0 : i32
    return %c0_i32, %c0_i32_0 : i32, i32
  }
  func.func @transform_2(%arg0: i32) -> (i32, i32) {
    %c0_i32 = arith.constant 0 : i32
    %c0_i32_0 = arith.constant 0 : i32
    %c0_i32_1 = arith.constant 0 : i32
    return %c0_i32, %c0_i32_0 : i32, i32
  }
  func.func @transform_3(%arg0: i32) -> (i32, i32) {
    %c0_i32 = arith.constant 0 : i32
    %c0_i32_0 = arith.constant 0 : i32
    %c0_i32_1 = arith.constant 0 : i32
    return %c0_i32, %c0_i32_0 : i32, i32
  }
  func.func @transform_4(%arg0: i32) -> (i32, i32) {
    %c0_i32 = arith.constant 0 : i32
    %c0_i32_0 = arith.constant 0 : i32
    %c0_i32_1 = arith.constant 0 : i32
    return %c0_i32, %c0_i32_0 : i32, i32
  }
  func.func @transform_5(%arg0: i32) -> (i32, i32) {
    %c0_i32 = arith.constant 0 : i32
    %c0_i32_0 = arith.constant 0 : i32
    %c0_i32_1 = arith.constant 0 : i32
    return %c0_i32, %c0_i32_0 : i32, i32
  }
  func.func @transform_6(%arg0: i32) -> (i32, i32) {
    %c0_i32 = arith.constant 0 : i32
    %c0_i32_0 = arith.constant 0 : i32
    %c0_i32_1 = arith.constant 0 : i32
    return %c0_i32, %c0_i32_0 : i32, i32
  }
  func.func @transform_7(%arg0: i32) -> (i32, i32) {
    %c0_i32 = arith.constant 0 : i32
    %c0_i32_0 = arith.constant 0 : i32
    return %arg0, %c0_i32 : i32, i32
  }
}

</mosaic_0001>

<bundles_post_ra>
// kernel: tpu_custom_call.1
= control target key start
LH: loop header
LB: loop body
LE: loop exit
PB: predicated region body
PF: predicated region fallthrough
CT: control target
= control target key end

     0   :  { %12 = vsyncpa [#allocation3], 0  ;;  %s932_s0 = inlined_call_operand.hbm [shape: f32[40,128], index: 0, kind: input, shape index: {}]   ;;  %s933_s1 = inlined_call_operand.hbm [shape: bf16[128,256], index: 1, kind: input, shape index: {}]   ;;  %s934_s2 = inlined_call_operand.vmem [shape: f32[1,256], index: 2, kind: input, shape index: {}]   ;;  %s935_s3 = inlined_call_operand.hbm [shape: bf16[256,128], index: 3, kind: input, shape index: {}]   ;;  %s936_s4 = inlined_call_operand.vmem [shape: f32[1,128], index: 4, kind: input, shape index: {}]   ;;  %s937_s5 = inlined_call_operand.vmem [shape: f32[1,128], index: 5, kind: input, shape index: {}]   ;;  %s938_s6 = inlined_call_operand.vmem [shape: f32[1,128], index: 6, kind: input, shape index: {}]   ;;  %s939_s7 = inlined_call_operand.hbm [shape: f32[40,128], index: 7, kind: output, shape index: {}]  }
   0x1   :  { %13 = vsyncpa [#allocation6], 0 }
   0x2   :  { %14 = vsyncpa [#allocation4], 0  ;;  %s783_s24 = smov [#allocation5]   ;;  %s784_s26 = smov [#allocation2]  }
   0x3   :  { %s32_s25 = sshll.u32 %s783_s24, 4  ;;  %s20_s27 = sshll.u32 %s784_s26, 4  ;;  %s33_s25 = int_to_ptr.vmem [resolvable:$true] %s32_s25  ;;  %s832_s27 = int_to_ptr.vmem [resolvable:$true] %s20_s27 }
   0x4   :  { %s689_s30 = scalar_lea.hbm %s933_s1, 2048 }
   0x5   :  { %p690_p0 = scmp.ne.s32.totalorder %s933_s1, %s689_s30  ;;  %p693_p1 = scmp.lt.u32.totalorder %s689_s30, %s933_s1 }
   0x7   :  { %p695_p2 = pnand %p693_p1, %p690_p0 }
   0x9   :  { %698 = shalt.err (!%p695_p2)
}
   0xa   :  { %s699_s12 = scalar_lea.vmem %s33_s25, 2048  ;;  %p704_p4 = scmp.lt.s32.totalorder %s33_s25, %s33_s25 }
   0xb   :  { %p700_p3 = scmp.ne.s32.totalorder %s33_s25, %s699_s12  ;;  %p705_p5 = scmp.lt.s32.totalorder %s699_s12, %s699_s12 }
   0xd   :  { %p706_p6 = por %p705_p5, %p704_p4 }
   0xf   :  { %p707_p7 = pnand %p706_p6, %p700_p3 }
  0x11   :  { %710 = shalt.err (!%p707_p7)
}
  0x12   :  { %s785_s13 = smov 128   ;;  %s786_s14 = smov 8  }
  0x13   :  { %38 = dma.hbm_to_vmem [thread:$0]  %s933_s1, 2048, %s33_s25, [#allocation6], %s785_s13, %s785_s13, %s786_s14  }
  0x14   :  { %s711_s19 = scalar_lea.hbm %s932_s0, 640 }
  0x15   :  { %p712_p8 = scmp.ne.s32.totalorder %s932_s0, %s711_s19  ;;  %p715_p9 = scmp.lt.u32.totalorder %s711_s19, %s932_s0 }
  0x17   :  { %p717_p10 = pnand %p715_p9, %p712_p8 }
  0x19   :  { %720 = shalt.err (!%p717_p10)
}
  0x1a   :  { %s721_s24 = scalar_lea.vmem %s832_s27, 640  ;;  %p726_p12 = scmp.lt.s32.totalorder %s832_s27, %s832_s27 }
  0x1b   :  { %p722_p11 = scmp.ne.s32.totalorder %s832_s27, %s721_s24  ;;  %p727_p13 = scmp.lt.s32.totalorder %s721_s24, %s721_s24 }
  0x1d   :  { %p728_p0 = por %p727_p13, %p726_p12 }
  0x1f   :  { %p729_p1 = pnand %p728_p0, %p722_p11 }
  0x21   :  { %732 = shalt.err (!%p729_p1)
}
  0x22   :  { %26 = dma.hbm_to_vmem [thread:$0]  %s932_s0, 640, %s832_s27, [#allocation3], %s785_s13, %s785_s13, %s786_s14  }
  0x23   :  { %s787_s26 = smov [#allocation7]   ;;  %s733_s8 = scalar_lea.hbm %s935_s3, 2048 }
  0x24   :  { %s46_s28 = sshll.u32 %s787_s26, 4  ;;  %p734_p2 = scmp.ne.s32.totalorder %s935_s3, %s733_s8  ;;  %s47_s28 = int_to_ptr.vmem [resolvable:$true] %s46_s28 }
  0x25   :  { %p737_p3 = scmp.lt.u32.totalorder %s733_s8, %s935_s3 }
  0x27   :  { %p739_p4 = pnand %p737_p3, %p734_p2 }
  0x29   :  { %742 = shalt.err (!%p739_p4)
}
  0x2a   :  { %s743_s15 = scalar_lea.vmem %s47_s28, 2048  ;;  %p748_p6 = scmp.lt.s32.totalorder %s47_s28, %s47_s28 }
  0x2b   :  { %p744_p5 = scmp.ne.s32.totalorder %s47_s28, %s743_s15  ;;  %p749_p7 = scmp.lt.s32.totalorder %s743_s15, %s743_s15 }
  0x2d   :  { %p750_p8 = por %p749_p7, %p748_p6 }
  0x2f   :  { %p751_p9 = pnand %p750_p8, %p744_p5 }
  0x31   :  { %754 = shalt.err (!%p751_p9)
}
  0x32   :  { %s788_s0 = smov 64   ;;  %s789_s27 = smov 4  }
  0x33   :  { %52 = dma.hbm_to_vmem [thread:$0]  %s935_s3, 2048, %s47_s28, [#allocation6], %s788_s0, %s788_s0, %s789_s27  }
  0x34   :  { %777 = dma.done.wait [#allocation3], 640  }
  0x35   :  { %778 = vsyncadd [#allocation3], 4294966656 }
  0x36   :  { %779 = dma.done.wait [#allocation6], 4096  }
  0x37   :  { %780 = vsyncadd [#allocation6], 4294963200  ;;  %v790_v0 = vmov 0   ;;  %v639_v1 = vld [vmem:[#allocation5 + $0x4] ss:$8 sps:$4 sm:$0xff]   ;;  %v667_v16 = vld [vmem:[#allocation7 + $0x50] sm:$0xff]   ;;  %v95_v41 = vlaneseq }
  0x38   :  { %217 = vmatprep.mubr.bf16.mxu0 %v790_v0  ;;  %v641_v2 = vld [vmem:[#allocation5] ss:$8 sps:$4 sm:$0xff]   ;;  %185 = vmatprep.subr.bf16.mxu0 %v639_v1  ;;  %v642_v3 = vld [vmem:[#allocation5 + $0x14] ss:$8 sps:$4 sm:$0xff]   ;;  %v644_v4 = vld [vmem:[#allocation5 + $0x10] ss:$8 sps:$4 sm:$0xff]  }
  0x39   :  { %186 = vmatpush1.bf16.msra.mxu0 %v641_v2  ;;  %v645_v5 = vld [vmem:[#allocation5 + $0x24] ss:$8 sps:$4 sm:$0xff]   ;;  %v647_v6 = vld [vmem:[#allocation5 + $0x20] ss:$8 sps:$4 sm:$0xff]   ;;  %v648_v7 = vld [vmem:[#allocation5 + $0x34] ss:$8 sps:$4 sm:$0xff]  }
  0x3a   :  { %187 = vmatprep.subr.bf16.mxu0 %v642_v3  ;;  %v650_v8 = vld [vmem:[#allocation5 + $0x30] ss:$8 sps:$4 sm:$0xff]   ;;  %v651_v9 = vld [vmem:[#allocation5 + $0x44] ss:$8 sps:$4 sm:$0xff]   ;;  %v653_v10 = vld [vmem:[#allocation5 + $0x40] ss:$8 sps:$4 sm:$0xff]  }
  0x3b   :  { %v663_v11 = vld [vmem:[#allocation7 + $0x40] sm:$0xff]   ;;  %v654_v12 = vld [vmem:[#allocation5 + $0x54] ss:$8 sps:$4 sm:$0xff]   ;;  %v665_v14 = vld [vmem:[#allocation7 + $0x48] sm:$0xff]   ;;  %v96_v42 = vshrl.u32 %v95_v41, 7 }
  0x3c   :  { %v664_v13 = vld [vmem:[#allocation7] sm:$0xff]   ;;  %596 = vmatprep.subr.bf16.mxu1 %v663_v11  ;;  %v666_v15 = vld [vmem:[#allocation7 + $0x8] sm:$0xff]   ;;  %v656_v17 = vld [vmem:[#allocation5 + $0x50] ss:$8 sps:$4 sm:$0xff]  }
  0x3d   :  { %188 = vmatpush1.bf16.msra.mxu0 %v644_v4  ;;  %597 = vmatpush3.bf16.msra.mxu1 %v664_v13  ;;  %v657_v18 = vld [vmem:[#allocation5 + $0x64] ss:$8 sps:$4 sm:$0xff]   ;;  %v668_v19 = vld [vmem:[#allocation7 + $0x10] sm:$0xff]   ;;  %v659_v20 = vld [vmem:[#allocation5 + $0x60] ss:$8 sps:$4 sm:$0xff]   ;;  %v97_v43 = vsub.s32 0, %v96_v42 }
  0x3e   :  { %189 = vmatprep.subr.bf16.mxu0 %v645_v5  ;;  %598 = vmatprep.subr.bf16.mxu1 %v665_v14  ;;  %v669_v21 = vld [vmem:[#allocation7 + $0x58] sm:$0xff]   ;;  %v671_v24 = vld [vmem:[#allocation7 + $0x60] sm:$0xff]   ;;  %v673_v29 = vld [vmem:[#allocation7 + $0x68] sm:$0xff]   ;;  %v101_v45 = vsub.s32 1, %v96_v42 }
  0x3f   :  { %v660_v22 = vld [vmem:[#allocation5 + $0x74] ss:$8 sps:$4 sm:$0xff]   ;;  %v662_v25 = vld [vmem:[#allocation5 + $0x70] ss:$8 sps:$4 sm:$0xff]   ;;  %v884_v27 = vld [vmem:[#allocation2 + $0x8] sm:$0xff] }
  0x40   :  { %v670_v23 = vld [vmem:[#allocation7 + $0x18] sm:$0xff]   ;;  %v672_v28 = vld [vmem:[#allocation7 + $0x20] sm:$0xff]   ;;  %v889_v31 = vld [vmem:[#allocation2 + $0x10] sm:$0xff] }
  0x41   :  { %190 = vmatpush1.bf16.msra.mxu0 %v647_v6  ;;  %599 = vmatpush3.bf16.msra.mxu1 %v666_v15  ;;  %v882_v26 = vld [vmem:[#allocation2] sm:$0xff]  ;;  %v891_v32 = vld [vmem:[#allocation2 + $0x18] sm:$0xff]  ;;  %v674_v36 = vld [vmem:[#allocation7 + $0x28] sm:$0xff]  }
  0x42   :  { %191 = vmatprep.subr.bf16.mxu0 %v648_v7  ;;  %600 = vmatprep.subr.bf16.mxu1 %v667_v16  ;;  %v74_v30 = vpack.c.bf16 %v884_v27, %v882_v26  ;;  %v75_v33 = vpack.c.bf16 %v891_v32, %v889_v31  ;;  %v896_v34 = vld [vmem:[#allocation2 + $0x20] sm:$0xff]  ;;  %v675_v37 = vld [vmem:[#allocation7 + $0x70] sm:$0xff]  }
  0x43   :  { %v76_v35 = vpack.c.bf16 %v896_v34, %v896_v34  ;;  %v676_v38 = vld [vmem:[#allocation7 + $0x30] sm:$0xff]   ;;  %v677_v39 = vld [vmem:[#allocation7 + $0x78] sm:$0xff]  }
  0x44   :  { %v678_v40 = vld [vmem:[#allocation7 + $0x38] sm:$0xff]  }
  0x45   :  { %192 = vmatpush1.bf16.msra.mxu0 %v650_v8  ;;  %601 = vmatpush3.bf16.msra.mxu1 %v668_v19  ;;  %v93_v44 = vld [vmem:[%s934_s2] sm:$0x3] }
  0x46   :  { %193 = vmatprep.subr.bf16.mxu0 %v651_v9  ;;  %602 = vmatprep.subr.bf16.mxu1 %v669_v21  ;;  %v98_v46 = vrot.slane %v93_v44, %v97_v43  ;;  %v102_v47 = vrot.slane %v93_v44, %v101_v45 }
  0x49   :  { %194 = vmatpush1.bf16.msra.mxu0 %v653_v10  ;;  %603 = vmatpush3.bf16.msra.mxu1 %v670_v23  ;;  %v577_v23 = vld [vmem:[%s936_s4] ss:$0 sm:$0xff] }
  0x4a   :  { %195 = vmatprep.subr.bf16.mxu0 %v654_v12  ;;  %604 = vmatprep.subr.bf16.mxu1 %v671_v24 }
  0x4d   :  { %196 = vmatpush1.bf16.msra.mxu0 %v656_v17  ;;  %605 = vmatpush3.bf16.msra.mxu1 %v672_v28 }
  0x4e   :  { %197 = vmatprep.subr.bf16.mxu0 %v657_v18  ;;  %606 = vmatprep.subr.bf16.mxu1 %v673_v29 }
  0x51   :  { %198 = vmatpush1.bf16.msra.mxu0 %v659_v20  ;;  %607 = vmatpush3.bf16.msra.mxu1 %v674_v36 }
  0x52   :  { %199 = vmatprep.subr.bf16.mxu0 %v660_v22  ;;  %608 = vmatprep.subr.bf16.mxu1 %v675_v37 }
  0x55   :  { %200 = vmatpush1.bf16.msra.mxu0 %v662_v25  ;;  %609 = vmatpush3.bf16.msra.mxu1 %v676_v38 }
  0x56   :  { %610 = vmatprep.subr.bf16.mxu1 %v677_v39 }
  0x58   :  { %218 = vmatmul.mubr.bf16.vlgmr.msra.gmra.mrb[0].mxu0 %v74_v30 }
  0x59   :  { %227 = vmatprep.mubr.bf16.mxu0 %v790_v0  ;;  %611 = vmatpush3.bf16.msra.mxu1 %v678_v40 }
  0x60   :  { %228 = vmatmul.mubr.bf16.gmra.mrb[4].mxu0 %v75_v33 }
  0x61   :  { %237 = vmatprep.mubr.bf16.mxu0 %v790_v0 }
  0x68   :  { %238 = vmatmul.mubr.bf16.gmra.mrb[8].mxu0 %v76_v35 }
 0x12b   :  { %v219_v48 = vpop.f32.mrb[0].mxu0 }
 0x12c   :  { %v220_v49 = vadd.f32 %v219_v48, %v98_v46  ;;  %v221_v50 = vpop.f32.mrb[1].mxu0 }
 0x12d   :  { %v222_v51 = vadd.f32 %v221_v50, %v102_v47  ;;  %v223_v52 = vpop.f32.mrb[2].mxu0 }
 0x12e   :  { %v224_v53 = vadd.f32 %v223_v52, %v98_v46  ;;  %v225_v54 = vpop.f32.mrb[3].mxu0  ;;  %v246_v56 = vmax.f32 %v220_v49, 0.0 }
 0x12f   :  { %v226_v55 = vadd.f32 %v225_v54, %v102_v47  ;;  %v247_v58 = vmax.f32 %v222_v51, 0.0 }
 0x130   :  { %v248_v57 = vmax.f32 %v224_v53, 0.0 }
 0x131   :  { %v249_v59 = vmax.f32 %v226_v55, 0.0 }
 0x132   :  { %v256_v60 = vpack.c.bf16 %v248_v57, %v246_v56 }
 0x133   :  { %v229_v61 = vpop.f32.mrb[4].mxu0  ;;  %v257_v62 = vpack.c.bf16 %v249_v59, %v247_v58 }
 0x134   :  { %v230_v63 = vadd.f32 %v229_v61, %v98_v46  ;;  %v231_v0 = vpop.f32.mrb[5].mxu0 }
 0x135   :  { %v232_v1 = vadd.f32 %v231_v0, %v102_v47  ;;  %v233_v2 = vpop.f32.mrb[6].mxu0  ;;  %429 = vmatprep.mubr.bf16.mxu1 %v257_v62 }
 0x136   :  { %v234_v3 = vadd.f32 %v233_v2, %v98_v46  ;;  %v235_v4 = vpop.f32.mrb[7].mxu0  ;;  %430 = vmatmul.mubr.bf16.vlgmr.msra.gmra.mrb[0].mxu1 %v256_v60  ;;  %v250_v6 = vmax.f32 %v230_v63, 0.0 }
 0x137   :  { %v236_v5 = vadd.f32 %v235_v4, %v102_v47  ;;  %v251_v8 = vmax.f32 %v232_v1, 0.0 }
 0x138   :  { %v252_v7 = vmax.f32 %v234_v3, 0.0 }
 0x139   :  { %v253_v9 = vmax.f32 %v236_v5, 0.0 }
 0x13a   :  { %v258_v10 = vpack.c.bf16 %v252_v7, %v250_v6 }
 0x13b   :  { %v259_v11 = vpack.c.bf16 %v253_v9, %v251_v8  ;;  %v239_v12 = vpop.f32.mrb[8].mxu0 }
 0x13c   :  { %v240_v13 = vadd.f32 %v239_v12, %v98_v46  ;;  %v241_v14 = vpop.f32.mrb[9].mxu0 }
 0x13d   :  { %v242_v15 = vadd.f32 %v241_v14, %v102_v47  ;;  %v243_v16 = vpop.f32.mrb[10].mxu0  ;;  %437 = vmatprep.mubr.bf16.mxu1 %v259_v11 }
 0x13e   :  { %v244_v17 = vpop.f32.mrb[11].mxu0  ;;  %438 = vmatmul.mubr.bf16.gmra.mrb[4].mxu1 %v258_v10  ;;  %v254_v19 = vmax.f32 %v240_v13, 0.0 }
 0x13f   :  { %v255_v18 = vmax.f32 %v242_v15, 0.0 }
 0x140   :  { %v260_v21 = vpack.c.bf16 %v254_v19, %v254_v19 }
 0x141   :  { %v261_v20 = vpack.c.bf16 %v255_v18, %v255_v18  ;;  %v594_v18 = vld [vmem:[%s937_s5] ss:$0 sm:$0xff]  ;;  %s791_s5 = smov [#allocation8]  }
 0x143   :  { %445 = vmatprep.mubr.bf16.mxu1 %v261_v20 }
 0x146   :  { %446 = vmatmul.mubr.bf16.gmra.mrb[8].mxu1 %v260_v21 }
 0x209   :  { %v612_v22 = vpop.f32.mrb[0].mxu1 }
 0x20a   :  { %v613_v24 = vpop.f32.mrb[1].mxu1 }
 0x20b   :  { %v614_v25 = vadd.f32 %v613_v24, %v612_v22  ;;  %v615_v28 = vpop.f32.mrb[2].mxu1 }
 0x20c   :  { %v616_v29 = vpop.f32.mrb[3].mxu1 }
 0x20d   :  { %v432_v30 = vadd.f32 %v614_v25, %v577_v23  ;;  %v617_v33 = vadd.f32 %v616_v29, %v615_v28 }
 0x20f   :  { %v435_v35 = vadd.f32 %v617_v33, %v577_v23  ;;  %v453_v36 = vadd.f32 %v432_v30, %v882_v26 }
 0x211   :  { %v618_v37 = vpop.f32.mrb[4].mxu1  ;;  %458 = vadd.xlane.f32.xlu0 %v453_v36  ;;  %v454_v41 = vadd.f32 %v435_v35, %v884_v27 }
 0x212   :  { %v619_v38 = vpop.f32.mrb[5].mxu1 }
 0x213   :  { %v620_v39 = vadd.f32 %v619_v38, %v618_v37  ;;  %v621_v40 = vpop.f32.mrb[6].mxu1 }
 0x214   :  { %v622_v42 = vpop.f32.mrb[7].mxu1 }
 0x215   :  { %v440_v43 = vadd.f32 %v620_v39, %v577_v23  ;;  %v623_v44 = vadd.f32 %v622_v42, %v621_v40  ;;  %460 = vadd.xlane.f32.xlu0 %v454_v41 }
 0x217   :  { %v443_v45 = vadd.f32 %v623_v44, %v577_v23  ;;  %v455_v46 = vadd.f32 %v440_v43, %v889_v31 }
 0x219   :  { %v624_v47 = vpop.f32.mrb[8].mxu1  ;;  %462 = vadd.xlane.f32.xlu1 %v455_v46  ;;  %v456_v26 = vadd.f32 %v443_v45, %v891_v32 }
 0x21a   :  { %v625_v48 = vpop.f32.mrb[9].mxu1 }
 0x21b   :  { %v626_v49 = vadd.f32 %v625_v48, %v624_v47  ;;  %v627_v50 = vpop.f32.mrb[10].mxu1 }
 0x21c   :  { %v628_v51 = vpop.f32.mrb[11].mxu1 }
 0x21d   :  { %v448_v52 = vadd.f32 %v626_v49, %v577_v23  ;;  %464 = vadd.xlane.f32.xlu1 %v456_v26  ;;  %v595_v23 = vld [vmem:[%s938_s6] ss:$0 sm:$0xff]  ;;  %s548_s6 = sshll.u32 %s791_s5, 4  ;;  %s549_s6 = int_to_ptr.vmem [resolvable:$true] %s548_s6 }
 0x21e   :  { %s755_s23 = scalar_lea.vmem %s549_s6, 640  ;;  %p760_p11 = scmp.lt.s32.totalorder %s549_s6, %s549_s6 }
 0x21f   :  { %v457_v53 = vadd.f32 %v448_v52, %v896_v34  ;;  %p756_p10 = scmp.ne.s32.totalorder %s549_s6, %s755_s23  ;;  %p761_p12 = scmp.lt.s32.totalorder %s755_s23, %s755_s23 }
 0x221   :  { %466 = vadd.xlane.f32.xlu0 %v457_v53  ;;  %p762_p13 = por %p761_p12, %p760_p11 }
 0x223   :  { %p763_p0 = pnand %p762_p13, %p756_p10 }
 0x29e   :  { %v459_v27 = vpop.xlane.xlu0 %458 }
 0x29f   :  { %v469_v54 = vmul.f32 0.0078125, %v459_v27 }
 0x2a1   :  { %v474_v55 = vsub.f32 %v453_v36, %v469_v54 }
 0x2a2   :  { %v461_v56 = vpop.xlane.xlu0 %460 }
 0x2a3   :  { %v470_v57 = vmul.f32 0.0078125, %v461_v56  ;;  %v479_v58 = vmul.f32 %v474_v55, %v474_v55 }
 0x2a5   :  { %v475_v31 = vsub.f32 %v454_v41, %v470_v57  ;;  %484 = vadd.xlane.f32.xlu1 %v479_v58 }
 0x2a6   :  { %v463_v59 = vpop.xlane.xlu1 %462 }
 0x2a7   :  { %v471_v60 = vmul.f32 0.0078125, %v463_v59  ;;  %v480_v61 = vmul.f32 %v475_v31, %v475_v31 }
 0x2a9   :  { %v476_v62 = vsub.f32 %v455_v46, %v471_v60  ;;  %486 = vadd.xlane.f32.xlu0 %v480_v61 }
 0x2aa   :  { %v465_v32 = vpop.xlane.xlu1 %464 }
 0x2ab   :  { %v472_v63 = vmul.f32 0.0078125, %v465_v32  ;;  %v481_v0 = vmul.f32 %v476_v62, %v476_v62 }
 0x2ad   :  { %v477_v1 = vsub.f32 %v456_v26, %v472_v63  ;;  %488 = vadd.xlane.f32.xlu1 %v481_v0 }
 0x2ae   :  { %v467_v34 = vpop.xlane.xlu0 %466 }
 0x2af   :  { %v473_v2 = vmul.f32 0.0078125, %v467_v34  ;;  %v482_v3 = vmul.f32 %v477_v1, %v477_v1 }
 0x2b1   :  { %v478_v4 = vsub.f32 %v457_v53, %v473_v2  ;;  %490 = vadd.xlane.f32.xlu0 %v482_v3 }
 0x2b3   :  { %v483_v5 = vmul.f32 %v478_v4, %v478_v4 }
 0x2b5   :  { %492 = vadd.xlane.f32.xlu1 %v483_v5 }
 0x332   :  { %v485_v6 = vpop.xlane.xlu1 %484 }
 0x333   :  { %v494_v7 = vmul.f32 0.0078125, %v485_v6 }
 0x335   :  { %v499_v8 = vadd.f32 1e-05, %v494_v7 }
 0x336   :  { %v487_v9 = vpop.xlane.xlu0 %486 }
 0x337   :  { %679 = vrsqrt.f32 %v499_v8  ;;  %v495_v10 = vmul.f32 0.0078125, %v487_v9 }
 0x339   :  { %v500_v11 = vadd.f32 1e-05, %v495_v10 }
 0x33a   :  { %v489_v12 = vpop.xlane.xlu1 %488 }
 0x33b   :  { %681 = vrsqrt.f32 %v500_v11  ;;  %v496_v13 = vmul.f32 0.0078125, %v489_v12 }
 0x33d   :  { %v501_v14 = vadd.f32 1e-05, %v496_v13 }
 0x33e   :  { %v491_v15 = vpop.xlane.xlu0 %490 }
 0x33f   :  { %683 = vrsqrt.f32 %v501_v14  ;;  %v497_v16 = vmul.f32 0.0078125, %v491_v15 }
 0x341   :  { %v680_v17 = vpop.eup %679  ;;  %v502_v19 = vadd.f32 1e-05, %v497_v16 }
 0x342   :  { %v509_v20 = vmul.f32 %v680_v17, %v474_v55  ;;  %v493_v21 = vpop.xlane.xlu1 %492 }
 0x343   :  { %685 = vrsqrt.f32 %v502_v19  ;;  %v498_v22 = vmul.f32 0.0078125, %v493_v21 }
 0x344   :  { %v521_v24 = vmul.f32 %v594_v18, %v509_v20 }
 0x345   :  { %v682_v25 = vpop.eup %681  ;;  %v503_v28 = vadd.f32 1e-05, %v498_v22 }
 0x346   :  { %v510_v29 = vmul.f32 %v682_v25, %v475_v31  ;;  %v533_v30 = vadd.f32 %v595_v23, %v521_v24 }
 0x347   :  { %687 = vrsqrt.f32 %v503_v28 }
 0x348   :  { %v522_v33 = vmul.f32 %v594_v18, %v510_v29  ;;  %538 = vst [vmem:[#allocation8] sm:$0xff] %v533_v30 }
 0x349   :  { %v684_v35 = vpop.eup %683 }
 0x34a   :  { %v511_v36 = vmul.f32 %v684_v35, %v476_v62  ;;  %v534_v37 = vadd.f32 %v595_v23, %v522_v33 }
 0x34c   :  { %v523_v38 = vmul.f32 %v594_v18, %v511_v36  ;;  %539 = vst [vmem:[#allocation8 + $0x8] sm:$0xff] %v534_v37 }
 0x34d   :  { %v686_v39 = vpop.eup %685 }
 0x34e   :  { %v512_v40 = vmul.f32 %v686_v39, %v477_v1  ;;  %v535_v41 = vadd.f32 %v595_v23, %v523_v38 }
 0x350   :  { %v524_v42 = vmul.f32 %v594_v18, %v512_v40  ;;  %540 = vst [vmem:[#allocation8 + $0x10] sm:$0xff] %v535_v41 }
 0x351   :  { %v688_v43 = vpop.eup %687 }
 0x352   :  { %v513_v44 = vmul.f32 %v688_v43, %v478_v4  ;;  %v536_v45 = vadd.f32 %v595_v23, %v524_v42 }
 0x354   :  { %v525_v46 = vmul.f32 %v594_v18, %v513_v44  ;;  %541 = vst [vmem:[#allocation8 + $0x18] sm:$0xff] %v536_v45 }
 0x356   :  { %v537_v47 = vadd.f32 %v595_v23, %v525_v46 }
 0x358   :  { %542 = vst [vmem:[#allocation8 + $0x20] sm:$0xff] %v537_v47 }
 0x359   :  { %766 = shalt.err (!%p763_p0)
}
 0x35a   :  { %s767_s25 = scalar_lea.hbm %s939_s7, 640 }
 0x35b   :  { %p768_p1 = scmp.ne.s32.totalorder %s939_s7, %s767_s25  ;;  %p771_p2 = scmp.lt.u32.totalorder %s767_s25, %s939_s7 }
 0x35d   :  { %p773_p3 = pnand %p771_p2, %p768_p1 }
 0x35f   :  { %776 = shalt.err (!%p773_p3)
}
 0x360   :  { %554 = dma.vmem_to_hbm [thread:$0]  %s549_s6, 640, %s939_s7, [#allocation4], %s785_s13, %s785_s13, %s786_s14  }
 0x361   :  { %781 = dma.done.wait [#allocation4], 640  }
 0x362   :  { %782 = vsyncadd [#allocation4], 4294966656 }
 0x363   :  { %558 = vsyncpa [#allocation3], 1 }
 0x364   :  { %559 = vsyncpa [#allocation6], 1 }
 0x365   :  { %560 = vsyncpa [#allocation4], 1 }

// kernel: tpu_custom_call.1
= control target key start
LH: loop header
LB: loop body
LE: loop exit
PB: predicated region body
PF: predicated region fallthrough
CT: control target
= control target key end

     0   :  { %12 = vsyncpa [#allocation3], 0  ;;  %s932_s0 = inlined_call_operand.hbm [shape: f32[40,128], index: 0, kind: input, shape index: {}]   ;;  %s933_s1 = inlined_call_operand.hbm [shape: bf16[128,256], index: 1, kind: input, shape index: {}]   ;;  %s934_s2 = inlined_call_operand.vmem [shape: f32[1,256], index: 2, kind: input, shape index: {}]   ;;  %s935_s3 = inlined_call_operand.hbm [shape: bf16[256,128], index: 3, kind: input, shape index: {}]   ;;  %s936_s4 = inlined_call_operand.vmem [shape: f32[1,128], index: 4, kind: input, shape index: {}]   ;;  %s937_s5 = inlined_call_operand.vmem [shape: f32[1,128], index: 5, kind: input, shape index: {}]   ;;  %s938_s6 = inlined_call_operand.vmem [shape: f32[1,128], index: 6, kind: input, shape index: {}]   ;;  %s939_s7 = inlined_call_operand.hbm [shape: f32[40,128], index: 7, kind: output, shape index: {}]  }
   0x1   :  { %13 = vsyncpa [#allocation6], 0 }
   0x2   :  { %14 = vsyncpa [#allocation4], 0  ;;  %s783_s24 = smov [#allocation5]   ;;  %s784_s26 = smov [#allocation2]  }
   0x3   :  { %s32_s25 = sshll.u32 %s783_s24, 4  ;;  %s20_s27 = sshll.u32 %s784_s26, 4  ;;  %s33_s25 = int_to_ptr.vmem [resolvable:$true] %s32_s25  ;;  %s832_s27 = int_to_ptr.vmem [resolvable:$true] %s20_s27 }
   0x4   :  { %s689_s30 = scalar_lea.hbm %s933_s1, 2048 }
   0x5   :  { %p690_p0 = scmp.ne.s32.totalorder %s933_s1, %s689_s30  ;;  %p693_p1 = scmp.lt.u32.totalorder %s689_s30, %s933_s1 }
   0x7   :  { %p695_p2 = pnand %p693_p1, %p690_p0 }
   0x9   :  { %698 = shalt.err (!%p695_p2)
}
   0xa   :  { %s699_s12 = scalar_lea.vmem %s33_s25, 2048  ;;  %p704_p4 = scmp.lt.s32.totalorder %s33_s25, %s33_s25 }
   0xb   :  { %p700_p3 = scmp.ne.s32.totalorder %s33_s25, %s699_s12  ;;  %p705_p5 = scmp.lt.s32.totalorder %s699_s12, %s699_s12 }
   0xd   :  { %p706_p6 = por %p705_p5, %p704_p4 }
   0xf   :  { %p707_p7 = pnand %p706_p6, %p700_p3 }
  0x11   :  { %710 = shalt.err (!%p707_p7)
}
  0x12   :  { %s785_s13 = smov 128   ;;  %s786_s14 = smov 8  }
  0x13   :  { %38 = dma.hbm_to_vmem [thread:$0]  %s933_s1, 2048, %s33_s25, [#allocation6], %s785_s13, %s785_s13, %s786_s14  }
  0x14   :  { %s711_s19 = scalar_lea.hbm %s932_s0, 640 }
  0x15   :  { %p712_p8 = scmp.ne.s32.totalorder %s932_s0, %s711_s19  ;;  %p715_p9 = scmp.lt.u32.totalorder %s711_s19, %s932_s0 }
  0x17   :  { %p717_p10 = pnand %p715_p9, %p712_p8 }
  0x19   :  { %720 = shalt.err (!%p717_p10)
}
  0x1a   :  { %s721_s24 = scalar_lea.vmem %s832_s27, 640  ;;  %p726_p12 = scmp.lt.s32.totalorder %s832_s27, %s832_s27 }
  0x1b   :  { %p722_p11 = scmp.ne.s32.totalorder %s832_s27, %s721_s24  ;;  %p727_p13 = scmp.lt.s32.totalorder %s721_s24, %s721_s24 }
  0x1d   :  { %p728_p0 = por %p727_p13, %p726_p12 }
  0x1f   :  { %p729_p1 = pnand %p728_p0, %p722_p11 }
  0x21   :  { %732 = shalt.err (!%p729_p1)
}
  0x22   :  { %26 = dma.hbm_to_vmem [thread:$0]  %s932_s0, 640, %s832_s27, [#allocation3], %s785_s13, %s785_s13, %s786_s14  }
  0x23   :  { %s787_s26 = smov [#allocation7]   ;;  %s733_s8 = scalar_lea.hbm %s935_s3, 2048 }
  0x24   :  { %s46_s28 = sshll.u32 %s787_s26, 4  ;;  %p734_p2 = scmp.ne.s32.totalorder %s935_s3, %s733_s8  ;;  %s47_s28 = int_to_ptr.vmem [resolvable:$true] %s46_s28 }
  0x25   :  { %p737_p3 = scmp.lt.u32.totalorder %s733_s8, %s935_s3 }
  0x27   :  { %p739_p4 = pnand %p737_p3, %p734_p2 }
  0x29   :  { %742 = shalt.err (!%p739_p4)
}
  0x2a   :  { %s743_s15 = scalar_lea.vmem %s47_s28, 2048  ;;  %p748_p6 = scmp.lt.s32.totalorder %s47_s28, %s47_s28 }
  0x2b   :  { %p744_p5 = scmp.ne.s32.totalorder %s47_s28, %s743_s15  ;;  %p749_p7 = scmp.lt.s32.totalorder %s743_s15, %s743_s15 }
  0x2d   :  { %p750_p8 = por %p749_p7, %p748_p6 }
  0x2f   :  { %p751_p9 = pnand %p750_p8, %p744_p5 }
  0x31   :  { %754 = shalt.err (!%p751_p9)
}
  0x32   :  { %s788_s0 = smov 64   ;;  %s789_s27 = smov 4  }
  0x33   :  { %52 = dma.hbm_to_vmem [thread:$0]  %s935_s3, 2048, %s47_s28, [#allocation6], %s788_s0, %s788_s0, %s789_s27  }
  0x34   :  { %777 = dma.done.wait [#allocation3], 640  }
  0x35   :  { %778 = vsyncadd [#allocation3], 4294966656 }
  0x36   :  { %779 = dma.done.wait [#allocation6], 4096  }
  0x37   :  { %780 = vsyncadd [#allocation6], 4294963200  ;;  %v790_v0 = vmov 0   ;;  %v639_v1 = vld [vmem:[#allocation5 + $0x4] ss:$8 sps:$4 sm:$0xff]   ;;  %v667_v16 = vld [vmem:[#allocation7 + $0x50] sm:$0xff]   ;;  %v95_v41 = vlaneseq }
  0x38   :  { %217 = vmatprep.mubr.bf16.mxu0 %v790_v0  ;;  %v641_v2 = vld [vmem:[#allocation5] ss:$8 sps:$4 sm:$0xff]   ;;  %185 = vmatprep.subr.bf16.mxu0 %v639_v1  ;;  %v642_v3 = vld [vmem:[#allocation5 + $0x14] ss:$8 sps:$4 sm:$0xff]   ;;  %v644_v4 = vld [vmem:[#allocation5 + $0x10] ss:$8 sps:$4 sm:$0xff]  }
  0x39   :  { %186 = vmatpush1.bf16.msra.mxu0 %v641_v2  ;;  %v645_v5 = vld [vmem:[#allocation5 + $0x24] ss:$8 sps:$4 sm:$0xff]   ;;  %v647_v6 = vld [vmem:[#allocation5 + $0x20] ss:$8 sps:$4 sm:$0xff]   ;;  %v648_v7 = vld [vmem:[#allocation5 + $0x34] ss:$8 sps:$4 sm:$0xff]  }
  0x3a   :  { %187 = vmatprep.subr.bf16.mxu0 %v642_v3  ;;  %v650_v8 = vld [vmem:[#allocation5 + $0x30] ss:$8 sps:$4 sm:$0xff]   ;;  %v651_v9 = vld [vmem:[#allocation5 + $0x44] ss:$8 sps:$4 sm:$0xff]   ;;  %v653_v10 = vld [vmem:[#allocation5 + $0x40] ss:$8 sps:$4 sm:$0xff]  }
  0x3b   :  { %v663_v11 = vld [vmem:[#allocation7 + $0x40] sm:$0xff]   ;;  %v654_v12 = vld [vmem:[#allocation5 + $0x54] ss:$8 sps:$4 sm:$0xff]   ;;  %v665_v14 = vld [vmem:[#allocation7 + $0x48] sm:$0xff]   ;;  %v96_v42 = vshrl.u32 %v95_v41, 7 }
  0x3c   :  { %v664_v13 = vld [vmem:[#allocation7] sm:$0xff]   ;;  %596 = vmatprep.subr.bf16.mxu1 %v663_v11  ;;  %v666_v15 = vld [vmem:[#allocation7 + $0x8] sm:$0xff]   ;;  %v656_v17 = vld [vmem:[#allocation5 + $0x50] ss:$8 sps:$4 sm:$0xff]  }
  0x3d   :  { %188 = vmatpush1.bf16.msra.mxu0 %v644_v4  ;;  %597 = vmatpush3.bf16.msra.mxu1 %v664_v13  ;;  %v657_v18 = vld [vmem:[#allocation5 + $0x64] ss:$8 sps:$4 sm:$0xff]   ;;  %v668_v19 = vld [vmem:[#allocation7 + $0x10] sm:$0xff]   ;;  %v659_v20 = vld [vmem:[#allocation5 + $0x60] ss:$8 sps:$4 sm:$0xff]   ;;  %v97_v43 = vsub.s32 0, %v96_v42 }
  0x3e   :  { %189 = vmatprep.subr.bf16.mxu0 %v645_v5  ;;  %598 = vmatprep.subr.bf16.mxu1 %v665_v14  ;;  %v669_v21 = vld [vmem:[#allocation7 + $0x58] sm:$0xff]   ;;  %v671_v24 = vld [vmem:[#allocation7 + $0x60] sm:$0xff]   ;;  %v673_v29 = vld [vmem:[#allocation7 + $0x68] sm:$0xff]   ;;  %v101_v45 = vsub.s32 1, %v96_v42 }
  0x3f   :  { %v660_v22 = vld [vmem:[#allocation5 + $0x74] ss:$8 sps:$4 sm:$0xff]   ;;  %v662_v25 = vld [vmem:[#allocation5 + $0x70] ss:$8 sps:$4 sm:$0xff]   ;;  %v884_v27 = vld [vmem:[#allocation2 + $0x8] sm:$0xff] }
  0x40   :  { %v670_v23 = vld [vmem:[#allocation7 + $0x18] sm:$0xff]   ;;  %v672_v28 = vld [vmem:[#allocation7 + $0x20] sm:$0xff]   ;;  %v889_v31 = vld [vmem:[#allocation2 + $0x10] sm:$0xff] }
  0x41   :  { %190 = vmatpush1.bf16.msra.mxu0 %v647_v6  ;;  %599 = vmatpush3.bf16.msra.mxu1 %v666_v15  ;;  %v882_v26 = vld [vmem:[#allocation2] sm:$0xff]  ;;  %v891_v32 = vld [vmem:[#allocation2 + $0x18] sm:$0xff]  ;;  %v674_v36 = vld [vmem:[#allocation7 + $0x28] sm:$0xff]  }
  0x42   :  { %191 = vmatprep.subr.bf16.mxu0 %v648_v7  ;;  %600 = vmatprep.subr.bf16.mxu1 %v667_v16  ;;  %v74_v30 = vpack.c.bf16 %v884_v27, %v882_v26  ;;  %v75_v33 = vpack.c.bf16 %v891_v32, %v889_v31  ;;  %v896_v34 = vld [vmem:[#allocation2 + $0x20] sm:$0xff]  ;;  %v675_v37 = vld [vmem:[#allocation7 + $0x70] sm:$0xff]  }
  0x43   :  { %v76_v35 = vpack.c.bf16 %v896_v34, %v896_v34  ;;  %v676_v38 = vld [vmem:[#allocation7 + $0x30] sm:$0xff]   ;;  %v677_v39 = vld [vmem:[#allocation7 + $0x78] sm:$0xff]  }
  0x44   :  { %v678_v40 = vld [vmem:[#allocation7 + $0x38] sm:$0xff]  }
  0x45   :  { %192 = vmatpush1.bf16.msra.mxu0 %v650_v8  ;;  %601 = vmatpush3.bf16.msra.mxu1 %v668_v19  ;;  %v93_v44 = vld [vmem:[%s934_s2] sm:$0x3] }
  0x46   :  { %193 = vmatprep.subr.bf16.mxu0 %v651_v9  ;;  %602 = vmatprep.subr.bf16.mxu1 %v669_v21  ;;  %v98_v46 = vrot.slane %v93_v44, %v97_v43  ;;  %v102_v47 = vrot.slane %v93_v44, %v101_v45 }
  0x49   :  { %194 = vmatpush1.bf16.msra.mxu0 %v653_v10  ;;  %603 = vmatpush3.bf16.msra.mxu1 %v670_v23  ;;  %v577_v23 = vld [vmem:[%s936_s4] ss:$0 sm:$0xff] }
  0x4a   :  { %195 = vmatprep.subr.bf16.mxu0 %v654_v12  ;;  %604 = vmatprep.subr.bf16.mxu1 %v671_v24 }
  0x4d   :  { %196 = vmatpush1.bf16.msra.mxu0 %v656_v17  ;;  %605 = vmatpush3.bf16.msra.mxu1 %v672_v28 }
  0x4e   :  { %197 = vmatprep.subr.bf16.mxu0 %v657_v18  ;;  %606 = vmatprep.subr.bf16.mxu1 %v673_v29 }
  0x51   :  { %198 = vmatpush1.bf16.msra.mxu0 %v659_v20  ;;  %607 = vmatpush3.bf16.msra.mxu1 %v674_v36 }
  0x52   :  { %199 = vmatprep.subr.bf16.mxu0 %v660_v22  ;;  %608 = vmatprep.subr.bf16.mxu1 %v675_v37 }
  0x55   :  { %200 = vmatpush1.bf16.msra.mxu0 %v662_v25  ;;  %609 = vmatpush3.bf16.msra.mxu1 %v676_v38 }
  0x56   :  { %610 = vmatprep.subr.bf16.mxu1 %v677_v39 }
  0x58   :  { %218 = vmatmul.mubr.bf16.vlgmr.msra.gmra.mrb[0].mxu0 %v74_v30 }
  0x59   :  { %227 = vmatprep.mubr.bf16.mxu0 %v790_v0  ;;  %611 = vmatpush3.bf16.msra.mxu1 %v678_v40 }
  0x60   :  { %228 = vmatmul.mubr.bf16.gmra.mrb[4].mxu0 %v75_v33 }
  0x61   :  { %237 = vmatprep.mubr.bf16.mxu0 %v790_v0 }
  0x68   :  { %238 = vmatmul.mubr.bf16.gmra.mrb[8].mxu0 %v76_v35 }
 0x12b   :  { %v219_v48 = vpop.f32.mrb[0].mxu0 }
 0x12c   :  { %v220_v49 = vadd.f32 %v219_v48, %v98_v46  ;;  %v221_v50 = vpop.f32.mrb[1].mxu0 }
 0x12d   :  { %v222_v51 = vadd.f32 %v221_v50, %v102_v47  ;;  %v223_v52 = vpop.f32.mrb[2].mxu0 }
 0x12e   :  { %v224_v53 = vadd.f32 %v223_v52, %v98_v46  ;;  %v225_v54 = vpop.f32.mrb[3].mxu0  ;;  %v246_v56 = vmax.f32 %v220_v49, 0.0 }
 0x12f   :  { %v226_v55 = vadd.f32 %v225_v54, %v102_v47  ;;  %v247_v58 = vmax.f32 %v222_v51, 0.0 }
 0x130   :  { %v248_v57 = vmax.f32 %v224_v53, 0.0 }
 0x131   :  { %v249_v59 = vmax.f32 %v226_v55, 0.0 }
 0x132   :  { %v256_v60 = vpack.c.bf16 %v248_v57, %v246_v56 }
 0x133   :  { %v229_v61 = vpop.f32.mrb[4].mxu0  ;;  %v257_v62 = vpack.c.bf16 %v249_v59, %v247_v58 }
 0x134   :  { %v230_v63 = vadd.f32 %v229_v61, %v98_v46  ;;  %v231_v0 = vpop.f32.mrb[5].mxu0 }
 0x135   :  { %v232_v1 = vadd.f32 %v231_v0, %v102_v47  ;;  %v233_v2 = vpop.f32.mrb[6].mxu0  ;;  %429 = vmatprep.mubr.bf16.mxu1 %v257_v62 }
 0x136   :  { %v234_v3 = vadd.f32 %v233_v2, %v98_v46  ;;  %v235_v4 = vpop.f32.mrb[7].mxu0  ;;  %430 = vmatmul.mubr.bf16.vlgmr.msra.gmra.mrb[0].mxu1 %v256_v60  ;;  %v250_v6 = vmax.f32 %v230_v63, 0.0 }
 0x137   :  { %v236_v5 = vadd.f32 %v235_v4, %v102_v47  ;;  %v251_v8 = vmax.f32 %v232_v1, 0.0 }
 0x138   :  { %v252_v7 = vmax.f32 %v234_v3, 0.0 }
 0x139   :  { %v253_v9 = vmax.f32 %v236_v5, 0.0 }
 0x13a   :  { %v258_v10 = vpack.c.bf16 %v252_v7, %v250_v6 }
 0x13b   :  { %v259_v11 = vpack.c.bf16 %v253_v9, %v251_v8  ;;  %v239_v12 = vpop.f32.mrb[8].mxu0 }
 0x13c   :  { %v240_v13 = vadd.f32 %v239_v12, %v98_v46  ;;  %v241_v14 = vpop.f32.mrb[9].mxu0 }
 0x13d   :  { %v242_v15 = vadd.f32 %v241_v14, %v102_v47  ;;  %v243_v16 = vpop.f32.mrb[10].mxu0  ;;  %437 = vmatprep.mubr.bf16.mxu1 %v259_v11 }
 0x13e   :  { %v244_v17 = vpop.f32.mrb[11].mxu0  ;;  %438 = vmatmul.mubr.bf16.gmra.mrb[4].mxu1 %v258_v10  ;;  %v254_v19 = vmax.f32 %v240_v13, 0.0 }
 0x13f   :  { %v255_v18 = vmax.f32 %v242_v15, 0.0 }
 0x140   :  { %v260_v21 = vpack.c.bf16 %v254_v19, %v254_v19 }
 0x141   :  { %v261_v20 = vpack.c.bf16 %v255_v18, %v255_v18  ;;  %v594_v18 = vld [vmem:[%s937_s5] ss:$0 sm:$0xff]  ;;  %s791_s5 = smov [#allocation8]  }
 0x143   :  { %445 = vmatprep.mubr.bf16.mxu1 %v261_v20 }
 0x146   :  { %446 = vmatmul.mubr.bf16.gmra.mrb[8].mxu1 %v260_v21 }
 0x209   :  { %v612_v22 = vpop.f32.mrb[0].mxu1 }
 0x20a   :  { %v613_v24 = vpop.f32.mrb[1].mxu1 }
 0x20b   :  { %v614_v25 = vadd.f32 %v613_v24, %v612_v22  ;;  %v615_v28 = vpop.f32.mrb[2].mxu1 }
 0x20c   :  { %v616_v29 = vpop.f32.mrb[3].mxu1 }
 0x20d   :  { %v432_v30 = vadd.f32 %v614_v25, %v577_v23  ;;  %v617_v33 = vadd.f32 %v616_v29, %v615_v28 }
 0x20f   :  { %v435_v35 = vadd.f32 %v617_v33, %v577_v23  ;;  %v453_v36 = vadd.f32 %v432_v30, %v882_v26 }
 0x211   :  { %v618_v37 = vpop.f32.mrb[4].mxu1  ;;  %458 = vadd.xlane.f32.xlu0 %v453_v36  ;;  %v454_v41 = vadd.f32 %v435_v35, %v884_v27 }
 0x212   :  { %v619_v38 = vpop.f32.mrb[5].mxu1 }
 0x213   :  { %v620_v39 = vadd.f32 %v619_v38, %v618_v37  ;;  %v621_v40 = vpop.f32.mrb[6].mxu1 }
 0x214   :  { %v622_v42 = vpop.f32.mrb[7].mxu1 }
 0x215   :  { %v440_v43 = vadd.f32 %v620_v39, %v577_v23  ;;  %v623_v44 = vadd.f32 %v622_v42, %v621_v40  ;;  %460 = vadd.xlane.f32.xlu0 %v454_v41 }
 0x217   :  { %v443_v45 = vadd.f32 %v623_v44, %v577_v23  ;;  %v455_v46 = vadd.f32 %v440_v43, %v889_v31 }
 0x219   :  { %v624_v47 = vpop.f32.mrb[8].mxu1  ;;  %462 = vadd.xlane.f32.xlu1 %v455_v46  ;;  %v456_v26 = vadd.f32 %v443_v45, %v891_v32 }
 0x21a   :  { %v625_v48 = vpop.f32.mrb[9].mxu1 }
 0x21b   :  { %v626_v49 = vadd.f32 %v625_v48, %v624_v47  ;;  %v627_v50 = vpop.f32.mrb[10].mxu1 }
 0x21c   :  { %v628_v51 = vpop.f32.mrb[11].mxu1 }
 0x21d   :  { %v448_v52 = vadd.f32 %v626_v49, %v577_v23  ;;  %464 = vadd.xlane.f32.xlu1 %v456_v26  ;;  %v595_v23 = vld [vmem:[%s938_s6] ss:$0 sm:$0xff]  ;;  %s548_s6 = sshll.u32 %s791_s5, 4  ;;  %s549_s6 = int_to_ptr.vmem [resolvable:$true] %s548_s6 }
 0x21e   :  { %s755_s23 = scalar_lea.vmem %s549_s6, 640  ;;  %p760_p11 = scmp.lt.s32.totalorder %s549_s6, %s549_s6 }
 0x21f   :  { %v457_v53 = vadd.f32 %v448_v52, %v896_v34  ;;  %p756_p10 = scmp.ne.s32.totalorder %s549_s6, %s755_s23  ;;  %p761_p12 = scmp.lt.s32.totalorder %s755_s23, %s755_s23 }
 0x221   :  { %466 = vadd.xlane.f32.xlu0 %v457_v53  ;;  %p762_p13 = por %p761_p12, %p760_p11 }
 0x223   :  { %p763_p0 = pnand %p762_p13, %p756_p10 }
 0x29e   :  { %v459_v27 = vpop.xlane.xlu0 %458 }
 0x29f   :  { %v469_v54 = vmul.f32 0.0078125, %v459_v27 }
 0x2a1   :  { %v474_v55 = vsub.f32 %v453_v36, %v469_v54 }
 0x2a2   :  { %v461_v56 = vpop.xlane.xlu0 %460 }
 0x2a3   :  { %v470_v57 = vmul.f32 0.0078125, %v461_v56  ;;  %v479_v58 = vmul.f32 %v474_v55, %v474_v55 }
 0x2a5   :  { %v475_v31 = vsub.f32 %v454_v41, %v470_v57  ;;  %484 = vadd.xlane.f32.xlu1 %v479_v58 }
 0x2a6   :  { %v463_v59 = vpop.xlane.xlu1 %462 }
 0x2a7   :  { %v471_v60 = vmul.f32 0.0078125, %v463_v59  ;;  %v480_v61 = vmul.f32 %v475_v31, %v475_v31 }
 0x2a9   :  { %v476_v62 = vsub.f32 %v455_v46, %v471_v60  ;;  %486 = vadd.xlane.f32.xlu0 %v480_v61 }
 0x2aa   :  { %v465_v32 = vpop.xlane.xlu1 %464 }
 0x2ab   :  { %v472_v63 = vmul.f32 0.0078125, %v465_v32  ;;  %v481_v0 = vmul.f32 %v476_v62, %v476_v62 }
 0x2ad   :  { %v477_v1 = vsub.f32 %v456_v26, %v472_v63  ;;  %488 = vadd.xlane.f32.xlu1 %v481_v0 }
 0x2ae   :  { %v467_v34 = vpop.xlane.xlu0 %466 }
 0x2af   :  { %v473_v2 = vmul.f32 0.0078125, %v467_v34  ;;  %v482_v3 = vmul.f32 %v477_v1, %v477_v1 }
 0x2b1   :  { %v478_v4 = vsub.f32 %v457_v53, %v473_v2  ;;  %490 = vadd.xlane.f32.xlu0 %v482_v3 }
 0x2b3   :  { %v483_v5 = vmul.f32 %v478_v4, %v478_v4 }
 0x2b5   :  { %492 = vadd.xlane.f32.xlu1 %v483_v5 }
 0x332   :  { %v485_v6 = vpop.xlane.xlu1 %484 }
 0x333   :  { %v494_v7 = vmul.f32 0.0078125, %v485_v6 }
 0x335   :  { %v499_v8 = vadd.f32 1e-05, %v494_v7 }
 0x336   :  { %v487_v9 = vpop.xlane.xlu0 %486 }
 0x337   :  { %679 = vrsqrt.f32 %v499_v8  ;;  %v495_v10 = vmul.f32 0.0078125, %v487_v9 }
 0x339   :  { %v500_v11 = vadd.f32 1e-05, %v495_v10 }
 0x33a   :  { %v489_v12 = vpop.xlane.xlu1 %488 }
 0x33b   :  { %681 = vrsqrt.f32 %v500_v11  ;;  %v496_v13 = vmul.f32 0.0078125, %v489_v12 }
 0x33d   :  { %v501_v14 = vadd.f32 1e-05, %v496_v13 }
 0x33e   :  { %v491_v15 = vpop.xlane.xlu0 %490 }
 0x33f   :  { %683 = vrsqrt.f32 %v501_v14  ;;  %v497_v16 = vmul.f32 0.0078125, %v491_v15 }
 0x341   :  { %v680_v17 = vpop.eup %679  ;;  %v502_v19 = vadd.f32 1e-05, %v497_v16 }
 0x342   :  { %v509_v20 = vmul.f32 %v680_v17, %v474_v55  ;;  %v493_v21 = vpop.xlane.xlu1 %492 }
 0x343   :  { %685 = vrsqrt.f32 %v502_v19  ;;  %v498_v22 = vmul.f32 0.0078125, %v493_v21 }
 0x344   :  { %v521_v24 = vmul.f32 %v594_v18, %v509_v20 }
 0x345   :  { %v682_v25 = vpop.eup %681  ;;  %v503_v28 = vadd.f32 1e-05, %v498_v22 }
 0x346   :  { %v510_v29 = vmul.f32 %v682_v25, %v475_v31  ;;  %v533_v30 = vadd.f32 %v595_v23, %v521_v24 }
 0x347   :  { %687 = vrsqrt.f32 %v503_v28 }
 0x348   :  { %v522_v33 = vmul.f32 %v594_v18, %v510_v29  ;;  %538 = vst [vmem:[#allocation8] sm:$0xff] %v533_v30 }
 0x349   :  { %v684_v35 = vpop.eup %683 }
 0x34a   :  { %v511_v36 = vmul.f32 %v684_v35, %v476_v62  ;;  %v534_v37 = vadd.f32 %v595_v23, %v522_v33 }
 0x34c   :  { %v523_v38 = vmul.f32 %v594_v18, %v511_v36  ;;  %539 = vst [vmem:[#allocation8 + $0x8] sm:$0xff] %v534_v37 }
 0x34d   :  { %v686_v39 = vpop.eup %685 }
 0x34e   :  { %v512_v40 = vmul.f32 %v686_v39, %v477_v1  ;;  %v535_v41 = vadd.f32 %v595_v23, %v523_v38 }
 0x350   :  { %v524_v42 = vmul.f32 %v594_v18, %v512_v40  ;;  %540 = vst [vmem:[#allocation8 + $0x10] sm:$0xff] %v535_v41 }
 0x351   :  { %v688_v43 = vpop.eup %687 }
 0x352   :  { %v513_v44 = vmul.f32 %v688_v43, %v478_v4  ;;  %v536_v45 = vadd.f32 %v595_v23, %v524_v42 }
 0x354   :  { %v525_v46 = vmul.f32 %v594_v18, %v513_v44  ;;  %541 = vst [vmem:[#allocation8 + $0x18] sm:$0xff] %v536_v45 }
 0x356   :  { %v537_v47 = vadd.f32 %v595_v23, %v525_v46 }
 0x358   :  { %542 = vst [vmem:[#allocation8 + $0x20] sm:$0xff] %v537_v47 }
 0x359   :  { %766 = shalt.err (!%p763_p0)
}
 0x35a   :  { %s767_s25 = scalar_lea.hbm %s939_s7, 640 }
 0x35b   :  { %p768_p1 = scmp.ne.s32.totalorder %s939_s7, %s767_s25  ;;  %p771_p2 = scmp.lt.u32.totalorder %s767_s25, %s939_s7 }
 0x35d   :  { %p773_p3 = pnand %p771_p2, %p768_p1 }
 0x35f   :  { %776 = shalt.err (!%p773_p3)
}
 0x360   :  { %554 = dma.vmem_to_hbm [thread:$0]  %s549_s6, 640, %s939_s7, [#allocation4], %s785_s13, %s785_s13, %s786_s14  }
 0x361   :  { %781 = dma.done.wait [#allocation4], 640  }
 0x362   :  { %782 = vsyncadd [#allocation4], 4294966656 }
 0x363   :  { %558 = vsyncpa [#allocation3], 1 }
 0x364   :  { %559 = vsyncpa [#allocation6], 1 }
 0x365   :  { %560 = vsyncpa [#allocation4], 1 }

</bundles_post_ra>
